<compile_context>
chip_gen: v7x
topology: tpu7x:2x2x1
jax: 0.10.0
libtpu: 0.0.40
codegen_flags: <defaults>
</compile_context>

<pallas_src>
import functools

import jax
import jax.numpy as jnp
from jax.experimental import pallas as pl
from jax.experimental.pallas import tpu as pltpu

HIDDEN1 = 64
HIDDEN2 = 32
_MAX_TILE_ROWS = 4096
_VMEM_TILE_BUDGET = 8 * 2**20  # generous: real footprint is ~1-3 MiB


def dqn_kernel(x_ref, w1_ref, b1_ref, w2_ref, b2_ref, w3_ref, b3_ref, o_ref):
    """Whole MLP forward for one batch tile, entirely in VMEM.

    x arrives f32 and is cast to bf16 in-kernel (free VPU work); weights are
    bf16, biases f32, accumulation f32 on the MXU.
    """
    x = x_ref[...].astype(jnp.bfloat16)  # in-kernel cast, overlapped with pipeline
    # layer 1: Linear + ReLU (f32 accumulate, bf16 activation for next MXU pass)
    h1 = jnp.dot(x, w1_ref[...], preferred_element_type=jnp.float32) + b1_ref[...]
    h1 = jnp.maximum(h1, 0.0).astype(jnp.bfloat16)
    # layer 2: Linear + ReLU
    h2 = jnp.dot(h1, w2_ref[...], preferred_element_type=jnp.float32) + b2_ref[...]
    h2 = jnp.maximum(h2, 0.0).astype(jnp.bfloat16)
    # layer 3: Linear (Q-values, no activation); output stored at true width d_out
    out = jnp.dot(h2, w3_ref[...], preferred_element_type=jnp.float32) + b3_ref[...]
    o_ref[...] = out.astype(o_ref.dtype)


def _num_tensorcores():
    """Best-effort TensorCore count per chip (v7x/v5p/v4 = 2, v5e/v6e = 1)."""
    try:
        kind = (getattr(jax.devices()[0], "device_kind", "") or "").lower()
    except Exception:
        return 1
    if "v7" in kind or "v5p" in kind or "v4" in kind:
        return 2
    return 1


def _tile_vmem_bytes(bb, d_in, d_out):
    # double-buffered f32 input tile + double-buffered f32 output tile
    # + bf16/f32 activation copies + bf16 weights + f32 biases.
    return (
        2 * bb * d_in * 4
        + 2 * bb * d_out * 4
        + bb * (HIDDEN1 + HIDDEN2) * (2 + 4)
        + (d_in * HIDDEN1 + HIDDEN1 * HIDDEN2 + HIDDEN2 * d_out) * 2
        + (HIDDEN1 + HIDDEN2 + d_out) * 4
    )


def _round16(n):
    return max(16, ((n + 15) // 16) * 16)


def _choose_block_b(B, d_in, d_out, n_tc):
    """Chip-aware batch tile size.

    Multi-TC (v7x): even number of grid steps so both cores stay busy.
    Single-TC (v5e/v6e): one tile when it fits — the grid is a serial loop
    there, so splitting is pure per-step overhead.
    """
    if n_tc >= 2 and B >= 32:
        steps = 2
        bb = _round16(-(-B // steps))
        while bb > 16 and (bb > _MAX_TILE_ROWS or _tile_vmem_bytes(bb, d_in, d_out) > _VMEM_TILE_BUDGET):
            steps += 2
            bb = _round16(-(-B // steps))
        return bb
    bb = min(_round16(B), _MAX_TILE_ROWS)
    while bb > 16 and _tile_vmem_bytes(bb, d_in, d_out) > _VMEM_TILE_BUDGET:
        bb = _round16(bb // 2)
    return bb


def prepare_params(w1, b1, w2, b2, w3, b3):
    """One-time param prep: bf16 weights, f32 (1, n) biases.

    Call once per parameter update; dqn_forward does no per-call casts/pads.
    """
    def bias2d(b):
        b = jnp.asarray(b, jnp.float32)
        return b.reshape(1, -1)

    return (
        jnp.asarray(w1, jnp.bfloat16), bias2d(b1),
        jnp.asarray(w2, jnp.bfloat16), bias2d(b2),
        jnp.asarray(w3, jnp.bfloat16), bias2d(b3),
    )


@functools.partial(jax.jit, static_argnames=("block_b",))
def dqn_forward(x, w1, b1, w2, b2, w3, b3, *, block_b=None):
    """Pallas-call wrapper. x: [B, input_dim] f32; params from prepare_params.

    Returns [B, output_dim] f32 Q-values.
    """
    B, d_in = x.shape
    d_out = w3.shape[1]
    if block_b is None:
        block_b = _choose_block_b(B, d_in, d_out, _num_tensorcores())

    # Pad ragged batches to a multiple of block_b (padded rows sliced off).
    B_pad = pl.cdiv(B, block_b) * block_b
    if B_pad != B:
        x = jnp.pad(x, ((0, B_pad - B), (0, 0)))

    grid = (B_pad // block_b,)

    in_specs = [
        pl.BlockSpec((block_b, d_in), lambda i: (i, 0)),
        pl.BlockSpec((d_in, HIDDEN1), lambda i: (0, 0)),
        pl.BlockSpec((1, HIDDEN1), lambda i: (0, 0)),
        pl.BlockSpec((HIDDEN1, HIDDEN2), lambda i: (0, 0)),
        pl.BlockSpec((1, HIDDEN2), lambda i: (0, 0)),
        pl.BlockSpec((HIDDEN2, d_out), lambda i: (0, 0)),
        pl.BlockSpec((1, d_out), lambda i: (0, 0)),
    ]
    # Output block's last dim == full array dim (d_out), so no 128-lane pad and
    # no 32x write amplification; second-to-last dim (block_b) is 16-aligned.
    out_specs = pl.BlockSpec((block_b, d_out), lambda i: (i, 0))

    est_vmem = _tile_vmem_bytes(block_b, d_in, d_out)
    vmem_limit = int(min(max(3 * est_vmem, 1 << 20), 32 * 2**20))

    weight_bytes = (d_in * HIDDEN1 + HIDDEN1 * HIDDEN2 + HIDDEN2 * d_out) * 2
    bias_bytes = (HIDDEN1 + HIDDEN2 + d_out) * 4
    cost = pl.CostEstimate(
        flops=2 * B_pad * (d_in * HIDDEN1 + HIDDEN1 * HIDDEN2 + HIDDEN2 * d_out),
        transcendentals=0,
        bytes_accessed=(
            B_pad * d_in * 4          # f32 input read
            + B_pad * d_out * 4       # f32 output write (true width)
            + weight_bytes
            + bias_bytes
        ),
    )

    out_padded = pl.pallas_call(
        dqn_kernel,
        out_shape=jax.ShapeDtypeStruct((B_pad, d_out), jnp.float32),
        grid_spec=pltpu.PrefetchScalarGridSpec(
            num_scalar_prefetch=0,
            grid=grid,
            in_specs=in_specs,
            out_specs=out_specs,
        ),
        compiler_params=pltpu.CompilerParams(
            dimension_semantics=("parallel",),
            vmem_limit_bytes=vmem_limit,
        ),
        cost_estimate=cost,
    )(x, w1, b1, w2, b2, w3, b3)

    if B_pad != B:
        out_padded = out_padded[:B]
    return out_padded


def init_params(key, input_dim, output_dim):
    """Deterministic init matching PyTorch nn.Linear's uniform(-1/sqrt(fan_in), +)."""
    ks = jax.random.split(key, 6)

    def lin(kw, kb, fan_in, fan_out):
        bound = 1.0 / jnp.sqrt(fan_in)
        w = jax.random.uniform(kw, (fan_in, fan_out), jnp.float32, -bound, bound)
        b = jax.random.uniform(kb, (1, fan_out), jnp.float32, -bound, bound)
        return w, b

    w1, b1 = lin(ks[0], ks[1], input_dim, HIDDEN1)
    w2, b2 = lin(ks[2], ks[3], HIDDEN1, HIDDEN2)
    w3, b3 = lin(ks[4], ks[5], HIDDEN2, output_dim)
    return w1, b1, w2, b2, w3, b3


def reference_forward_f32(x, w1, b1, w2, b2, w3, b3):
    h1 = jnp.maximum(x @ w1 + b1, 0.0)
    h2 = jnp.maximum(h1 @ w2 + b2, 0.0)
    return h2 @ w3 + b3


def reference_forward_bf16(x, w1, b1, w2, b2, w3, b3):
    """Same mixed-precision recipe as the kernel (bf16 MXU inputs, f32 accumulate)."""
    bf = jnp.bfloat16
    h1 = jnp.dot(x.astype(bf), w1.astype(bf), preferred_element_type=jnp.float32) + b1
    h1 = jnp.maximum(h1, 0.0).astype(bf)
    h2 = jnp.dot(h1, w2.astype(bf), preferred_element_type=jnp.float32) + b2
    h2 = jnp.maximum(h2, 0.0).astype(bf)
    return jnp.dot(h2, w3.astype(bf), preferred_element_type=jnp.float32) + b3


if __name__ == "__main__":
    key = jax.random.PRNGKey(0)
    k_x, k_p = jax.random.split(key)

    batch, input_dim, output_dim = 256, 16, 4
    x = jax.random.normal(k_x, (batch, input_dim), jnp.float32)
    params_f32 = init_params(k_p, input_dim, output_dim)

    # One-time param prep (bf16 weights / f32 biases) — reused across calls.
    params = prepare_params(*params_f32)

    out = dqn_forward(x, *params)
    out = jax.block_until_ready(out)

    assert out.shape == (batch, output_dim)
    ref_mixed = reference_forward_bf16(x, *params_f32)
    ref_f32 = reference_forward_f32(x, *params_f32)
    assert jnp.allclose(out, ref_mixed, atol=1e-3, rtol=1e-3), "mismatch vs mixed-precision reference"
    assert jnp.allclose(out, ref_f32, atol=5e-2, rtol=5e-2), "mismatch vs f32 reference"

    print("KERNEL_OK")
</pallas_src>

<mosaic_0001>
module attributes {stable_mosaic.version = 11 : i64} {
  func.func @dqn_kernel(%arg0: i32, %arg1: memref<256x16xf32, #tpu.memory_space<vmem>>, %arg2: memref<16x64xbf16, #tpu.memory_space<vmem>>, %arg3: memref<1x64xf32, #tpu.memory_space<vmem>>, %arg4: memref<64x32xbf16, #tpu.memory_space<vmem>>, %arg5: memref<1x32xf32, #tpu.memory_space<vmem>>, %arg6: memref<32x4xbf16, #tpu.memory_space<vmem>>, %arg7: memref<1x4xf32, #tpu.memory_space<vmem>>, %arg8: memref<256x4xf32, #tpu.memory_space<vmem>>) attributes {dimension_semantics = [#tpu.dimension_semantics<parallel>], iteration_bounds = array<i64: 1>, scalar_prefetch = 0 : i64, scratch_operands = 0 : i64, tpu.core_type = #tpu.core_type<tc>, window_params = [{transform_indices = @transform_0, window_bounds = array<i64: 256, 16>}, {pipeline_mode = #tpu.pipeline_mode<synchronous>, transform_indices = @transform_1, window_bounds = array<i64: 16, 64>}, {pipeline_mode = #tpu.pipeline_mode<synchronous>, transform_indices = @transform_2, window_bounds = array<i64: 1, 64>}, {pipeline_mode = #tpu.pipeline_mode<synchronous>, transform_indices = @transform_3, window_bounds = array<i64: 64, 32>}, {pipeline_mode = #tpu.pipeline_mode<synchronous>, transform_indices = @transform_4, window_bounds = array<i64: 1, 32>}, {pipeline_mode = #tpu.pipeline_mode<synchronous>, transform_indices = @transform_5, window_bounds = array<i64: 32, 4>}, {pipeline_mode = #tpu.pipeline_mode<synchronous>, transform_indices = @transform_6, window_bounds = array<i64: 1, 4>}, {transform_indices = @transform_7, window_bounds = array<i64: 256, 4>}]} {
    %c0 = arith.constant 0 : index
    %c0_0 = arith.constant 0 : index
    %0 = vector.load %arg1[%c0, %c0_0] : memref<256x16xf32, #tpu.memory_space<vmem>>, vector<256x16xf32>
    %1 = arith.truncf %0 : vector<256x16xf32> to vector<256x16xbf16>
    %c0_1 = arith.constant 0 : index
    %c0_2 = arith.constant 0 : index
    %2 = vector.load %arg2[%c0_1, %c0_2] : memref<16x64xbf16, #tpu.memory_space<vmem>>, vector<16x64xbf16>
    %cst = arith.constant dense<0.000000e+00> : vector<256x64xf32>
    %3 = tpu.matmul %1, %2, %cst {dimension_numbers = #tpu.dot_dimension_numbers<[1], [0], [0], [1], [0, 0, 1, 1], [], []>} : vector<256x16xbf16>, vector<16x64xbf16>, vector<256x64xf32> -> vector<256x64xf32>
    %c0_3 = arith.constant 0 : index
    %c0_4 = arith.constant 0 : index
    %4 = vector.load %arg3[%c0_3, %c0_4] : memref<1x64xf32, #tpu.memory_space<vmem>>, vector<1x64xf32>
    %5 = vector.broadcast %4 : vector<1x64xf32> to vector<256x64xf32>
    %6 = arith.addf %3, %5 : vector<256x64xf32>
    %cst_5 = arith.constant 0.000000e+00 : f32
    %7 = vector.broadcast %cst_5 : f32 to vector<256x64xf32>
    %8 = arith.maximumf %6, %7 : vector<256x64xf32>
    %9 = arith.truncf %8 : vector<256x64xf32> to vector<256x64xbf16>
    %c0_6 = arith.constant 0 : index
    %c0_7 = arith.constant 0 : index
    %10 = vector.load %arg4[%c0_6, %c0_7] : memref<64x32xbf16, #tpu.memory_space<vmem>>, vector<64x32xbf16>
    %cst_8 = arith.constant dense<0.000000e+00> : vector<256x32xf32>
    %11 = tpu.matmul %9, %10, %cst_8 {dimension_numbers = #tpu.dot_dimension_numbers<[1], [0], [0], [1], [0, 0, 1, 1], [], []>} : vector<256x64xbf16>, vector<64x32xbf16>, vector<256x32xf32> -> vector<256x32xf32>
    %c0_9 = arith.constant 0 : index
    %c0_10 = arith.constant 0 : index
    %12 = vector.load %arg5[%c0_9, %c0_10] : memref<1x32xf32, #tpu.memory_space<vmem>>, vector<1x32xf32>
    %13 = vector.broadcast %12 : vector<1x32xf32> to vector<256x32xf32>
    %14 = arith.addf %11, %13 : vector<256x32xf32>
    %cst_11 = arith.constant 0.000000e+00 : f32
    %15 = vector.broadcast %cst_11 : f32 to vector<256x32xf32>
    %16 = arith.maximumf %14, %15 : vector<256x32xf32>
    %17 = arith.truncf %16 : vector<256x32xf32> to vector<256x32xbf16>
    %c0_12 = arith.constant 0 : index
    %c0_13 = arith.constant 0 : index
    %18 = vector.load %arg6[%c0_12, %c0_13] : memref<32x4xbf16, #tpu.memory_space<vmem>>, vector<32x4xbf16>
    %cst_14 = arith.constant dense<0.000000e+00> : vector<256x4xf32>
    %19 = tpu.matmul %17, %18, %cst_14 {dimension_numbers = #tpu.dot_dimension_numbers<[1], [0], [0], [1], [0, 0, 1, 1], [], []>} : vector<256x32xbf16>, vector<32x4xbf16>, vector<256x4xf32> -> vector<256x4xf32>
    %c0_15 = arith.constant 0 : index
    %c0_16 = arith.constant 0 : index
    %20 = vector.load %arg7[%c0_15, %c0_16] : memref<1x4xf32, #tpu.memory_space<vmem>>, vector<1x4xf32>
    %21 = vector.broadcast %20 : vector<1x4xf32> to vector<256x4xf32>
    %22 = arith.addf %19, %21 : vector<256x4xf32>
    %c0_17 = arith.constant 0 : index
    %c0_18 = arith.constant 0 : index
    %23 = vector.load %arg8[%c0_17, %c0_18] : memref<256x4xf32, #tpu.memory_space<vmem>>, vector<256x4xf32>
    tpu.vector_store %arg8[%c0_17, %c0_18], %22 {strides = array<i32>} : memref<256x4xf32, #tpu.memory_space<vmem>>, vector<256x4xf32>,
    return
  }
  func.func @transform_0(%arg0: i32) -> (i32, i32) {
    %c0_i32 = arith.constant 0 : i32
    %c0_i32_0 = arith.constant 0 : i32
    return %arg0, %c0_i32 : i32, i32
  }
  func.func @transform_1(%arg0: i32) -> (i32, i32) {
    %c0_i32 = arith.constant 0 : i32
    %c0_i32_0 = arith.constant 0 : i32
    %c0_i32_1 = arith.constant 0 : i32
    return %c0_i32, %c0_i32_0 : i32, i32
  }
  func.func @transform_2(%arg0: i32) -> (i32, i32) {
    %c0_i32 = arith.constant 0 : i32
    %c0_i32_0 = arith.constant 0 : i32
    %c0_i32_1 = arith.constant 0 : i32
    return %c0_i32, %c0_i32_0 : i32, i32
  }
  func.func @transform_3(%arg0: i32) -> (i32, i32) {
    %c0_i32 = arith.constant 0 : i32
    %c0_i32_0 = arith.constant 0 : i32
    %c0_i32_1 = arith.constant 0 : i32
    return %c0_i32, %c0_i32_0 : i32, i32
  }
  func.func @transform_4(%arg0: i32) -> (i32, i32) {
    %c0_i32 = arith.constant 0 : i32
    %c0_i32_0 = arith.constant 0 : i32
    %c0_i32_1 = arith.constant 0 : i32
    return %c0_i32, %c0_i32_0 : i32, i32
  }
  func.func @transform_5(%arg0: i32) -> (i32, i32) {
    %c0_i32 = arith.constant 0 : i32
    %c0_i32_0 = arith.constant 0 : i32
    %c0_i32_1 = arith.constant 0 : i32
    return %c0_i32, %c0_i32_0 : i32, i32
  }
  func.func @transform_6(%arg0: i32) -> (i32, i32) {
    %c0_i32 = arith.constant 0 : i32
    %c0_i32_0 = arith.constant 0 : i32
    %c0_i32_1 = arith.constant 0 : i32
    return %c0_i32, %c0_i32_0 : i32, i32
  }
  func.func @transform_7(%arg0: i32) -> (i32, i32) {
    %c0_i32 = arith.constant 0 : i32
    %c0_i32_0 = arith.constant 0 : i32
    return %arg0, %c0_i32 : i32, i32
  }
}

</mosaic_0001>

<bundles_post_ra>
// kernel: dqn_forward.1
= control target key start
LH: loop header
LB: loop body
LE: loop exit
PB: predicated region body
PF: predicated region fallthrough
CT: control target
= control target key end

     0   :  { %vm90_vm0 = vcmask 130048   ;;  %vm387_vm1 = vcmask 523264   ;;  %vm668_vm2 = vcmask 261120   ;;  %vm878_vm3 = vcmask 31744   ;;  %s1597_s1 = inlined_call_operand.vmem [shape: bf16[16,64], index: 1, kind: input, shape index: {}]   ;;  %s1598_s0 = inlined_call_operand.vmem [shape: f32[256,16], index: 0, kind: input, shape index: {}]   ;;  %s1599_s3 = inlined_call_operand.vmem [shape: bf16[64,32], index: 3, kind: input, shape index: {}]   ;;  %s1600_s5 = inlined_call_operand.vmem [shape: bf16[32,4], index: 5, kind: input, shape index: {}]   ;;  %s1601_s2 = inlined_call_operand.vmem [shape: f32[1,64], index: 2, kind: input, shape index: {}]   ;;  %s1602_s4 = inlined_call_operand.vmem [shape: f32[1,32], index: 4, kind: input, shape index: {}]   ;;  %s1603_s6 = inlined_call_operand.vmem [shape: f32[1,4], index: 6, kind: input, shape index: {}]   ;;  %s1604_s7 = inlined_call_operand.vmem [shape: f32[256,4], index: 7, kind: output, shape index: {}]  }
   0x1   :  { %v1140_v0 = vld [vmem:[%s1597_s1] sm:$0xff]   ;;  %v28_v2 = vld [vmem:[%s1598_s0 + $0x8] sm:$0xff]  ;;  %v29_v3 = vld [vmem:[%s1598_s0 + $0x10] sm:$0xff] }
   0x2   :  { %v27_v1 = vld [vmem:[%s1598_s0] sm:$0xff]  ;;  %1028 = vmatprep.subr.bf16.mxu0 %v1140_v0  ;;  %v30_v5 = vld [vmem:[%s1598_s0 + $0x18] sm:$0xff]  ;;  %v32_v7 = vld [vmem:[%s1598_s0 + $0x28] sm:$0xff]  ;;  %1138 = vmatprep.subr.bf16.mxu1 %v1140_v0 }
   0x3   :  { %v59_v4 = vpack.c.bf16 %v28_v2, %v27_v1  ;;  %v31_v6 = vld [vmem:[%s1598_s0 + $0x20] sm:$0xff]  ;;  %1029 = vmatpush3.bf16.msra.mxu0 %v1140_v0  ;;  %v60_v8 = vpack.c.bf16 %v30_v5, %v29_v3  ;;  %1139 = vmatpush3.bf16.msra.mxu1 %v1140_v0  ;;  %v33_v10 = vld [vmem:[%s1598_s0 + $0x30] sm:$0xff]  ;;  %v34_v11 = vld [vmem:[%s1598_s0 + $0x38] sm:$0xff] }
   0x4   :  { %v61_v9 = vpack.c.bf16 %v32_v7, %v31_v6  ;;  %v43_v12 = vld [vmem:[%s1598_s0 + $0x80] sm:$0xff]  ;;  %v44_v13 = vld [vmem:[%s1598_s0 + $0x88] sm:$0xff]  ;;  %v45_v15 = vld [vmem:[%s1598_s0 + $0x90] sm:$0xff]  ;;  %v62_v23 = vpack.c.bf16 %v34_v11, %v33_v10 }
   0x5   :  { %1030 = vmatprep.mubr.msk.bf16.mxu0 %vm90_vm0, %v59_v4  ;;  %v67_v14 = vpack.c.bf16 %v44_v13, %v43_v12  ;;  %v46_v16 = vld [vmem:[%s1598_s0 + $0x98] sm:$0xff]  ;;  %v47_v17 = vld [vmem:[%s1598_s0 + $0xa0] sm:$0xff]  ;;  %v36_v19 = vld [vmem:[%s1598_s0 + $0x48] sm:$0xff] }
   0x6   :  { %1031 = vmatmul.mubr.msk.bf16.vlgmr.msra.gmra.mrb[0].mxu0 %vm90_vm0, %v60_v8  ;;  %v35_v18 = vld [vmem:[%s1598_s0 + $0x40] sm:$0xff]  ;;  %v68_v20 = vpack.c.bf16 %v46_v16, %v45_v15  ;;  %v48_v21 = vld [vmem:[%s1598_s0 + $0xa8] sm:$0xff]  ;;  %v49_v24 = vld [vmem:[%s1598_s0 + $0xb0] sm:$0xff] }
   0x7   :  { %1034 = vmatprep.mubr.msk.bf16.mxu0 %vm90_vm0, %v61_v9  ;;  %1046 = vmatprep.mubr.msk.bf16.mxu1 %vm90_vm0, %v67_v14  ;;  %v69_v22 = vpack.c.bf16 %v48_v21, %v47_v17  ;;  %v50_v25 = vld [vmem:[%s1598_s0 + $0xb8] sm:$0xff]  ;;  %v63_v26 = vpack.c.bf16 %v36_v19, %v35_v18  ;;  %v51_v27 = vld [vmem:[%s1598_s0 + $0xc0] sm:$0xff]  ;;  %v52_v28 = vld [vmem:[%s1598_s0 + $0xc8] sm:$0xff] }
   0x8   :  { %1047 = vmatmul.mubr.msk.bf16.vlgmr.msra.gmra.mrb[0].mxu1 %vm90_vm0, %v68_v20  ;;  %v1141_v29 = vld [vmem:[%s1599_s3] sm:$0xff]   ;;  %v1142_v30 = vld [vmem:[%s1599_s3 + $0x8] sm:$0xff]   ;;  %v70_v31 = vpack.c.bf16 %v50_v25, %v49_v24  ;;  %v37_v32 = vld [vmem:[%s1598_s0 + $0x50] sm:$0xff]  ;;  %v71_v34 = vpack.c.bf16 %v52_v28, %v51_v27 }
   0x9   :  { %1050 = vmatprep.mubr.msk.bf16.mxu1 %vm90_vm0, %v69_v22  ;;  %1062 = vmatprep.subr.bf16.mxu1 %v1141_v29  ;;  %v38_v33 = vld [vmem:[%s1598_s0 + $0x58] sm:$0xff]  ;;  %v39_v35 = vld [vmem:[%s1598_s0 + $0x60] sm:$0xff]  ;;  %v40_v36 = vld [vmem:[%s1598_s0 + $0x68] sm:$0xff] }
   0xa   :  { %1063 = vmatpush3.bf16.msra.mxu1 %v1141_v29  ;;  %v1143_v37 = vld [vmem:[%s1599_s3 + $0x10] sm:$0xff]   ;;  %v64_v38 = vpack.c.bf16 %v38_v33, %v37_v32  ;;  %v65_v39 = vpack.c.bf16 %v40_v36, %v39_v35  ;;  %v54_v41 = vld [vmem:[%s1598_s0 + $0xd8] sm:$0xff]  ;;  %v55_v42 = vld [vmem:[%s1598_s0 + $0xe0] sm:$0xff] }
   0xb   :  { %1064 = vmatprep.subr.bf16.mxu1 %v1142_v30  ;;  %v53_v40 = vld [vmem:[%s1598_s0 + $0xd0] sm:$0xff]  ;;  %v56_v43 = vld [vmem:[%s1598_s0 + $0xe8] sm:$0xff]  ;;  %v42_v46 = vld [vmem:[%s1598_s0 + $0x78] sm:$0xff] }
   0xc   :  { %v72_v44 = vpack.c.bf16 %v54_v41, %v53_v40  ;;  %v41_v45 = vld [vmem:[%s1598_s0 + $0x70] sm:$0xff]  ;;  %v73_v47 = vpack.c.bf16 %v56_v43, %v55_v42  ;;  %v58_v50 = vld [vmem:[%s1598_s0 + $0xf8] sm:$0xff]  ;;  %v1145_v53 = vld [vmem:[%s1600_s5] sm:$0xff]  }
   0xd   :  { %v66_v48 = vpack.c.bf16 %v42_v46, %v41_v45  ;;  %v57_v49 = vld [vmem:[%s1598_s0 + $0xf0] sm:$0xff]  ;;  %v1144_v52 = vld [vmem:[%s1599_s3 + $0x18] sm:$0xff]   ;;  %v1146_v54 = vld [vmem:[%s1600_s5 + $0x8] sm:$0xff]   ;;  %1102 = vmatprep.subr.bf16.mxu0 %v1145_v53 }
   0xe   :  { %1035 = vmatmul.mubr.msk.bf16.gmra.mrb[4].mxu0 %vm90_vm0, %v62_v23  ;;  %1065 = vmatpush3.bf16.msra.mxu1 %v1142_v30  ;;  %v74_v51 = vpack.c.bf16 %v58_v50, %v57_v49  ;;  %v1323_v55 = vld [vmem:[%s1601_s2] ss:$0 sm:$0xff] }
   0xf   :  { %1038 = vmatprep.mubr.msk.bf16.mxu0 %vm90_vm0, %v63_v26  ;;  %1066 = vmatprep.subr.bf16.mxu1 %v1143_v37 }
  0x10   :  { %1051 = vmatmul.mubr.msk.bf16.gmra.mrb[4].mxu1 %vm90_vm0, %v70_v31  ;;  %1103 = vmatpush3.bf16.msra.mxu0 %v1145_v53 }
  0x11   :  { %1054 = vmatprep.mubr.msk.bf16.mxu1 %vm90_vm0, %v71_v34  ;;  %1104 = vmatprep.subr.bf16.mxu0 %v1146_v54 }
  0x12   :  { %1067 = vmatpush3.bf16.msra.mxu1 %v1143_v37 }
  0x13   :  { %1068 = vmatprep.subr.bf16.mxu1 %v1144_v52 }
  0x14   :  { %1105 = vmatpush3.bf16.msra.mxu0 %v1146_v54 }
  0x16   :  { %1039 = vmatmul.mubr.msk.bf16.gmra.mrb[8].mxu0 %vm90_vm0, %v64_v38  ;;  %1069 = vmatpush3.bf16.msra.mxu1 %v1144_v52 }
  0x17   :  { %1042 = vmatprep.mubr.msk.bf16.mxu0 %vm90_vm0, %v65_v39 }
  0x18   :  { %1055 = vmatmul.mubr.msk.bf16.gmra.mrb[8].mxu1 %vm90_vm0, %v72_v44 }
  0x19   :  { %1058 = vmatprep.mubr.msk.bf16.mxu1 %vm90_vm0, %v73_v47 }
  0x1e   :  { %1043 = vmatmul.mubr.msk.bf16.gmra.mrb[12].mxu0 %vm90_vm0, %v66_v48 }
  0x20   :  { %1059 = vmatmul.mubr.msk.bf16.gmra.mrb[12].mxu1 %vm90_vm0, %v74_v51 }
  0xd9   :  { %v1032_v56 = vpop.f32.mrb[0].mxu0 }
  0xda   :  { %v182_v57 = vadd.f32 %v1032_v56, %v1323_v55  ;;  %v173_v58 = vpop.f32.mrb[1].mxu0 }
  0xdb   :  { %v174_v59 = vadd.f32 %v1323_v55, %v173_v58  ;;  %v1033_v60 = vpop.f32.mrb[2].mxu0  ;;  %v1048_v0 = vpop.f32.mrb[0].mxu1 }
  0xdc   :  { %v185_v61 = vadd.f32 %v1033_v60, %v1323_v55  ;;  %v176_v62 = vpop.f32.mrb[3].mxu0  ;;  %v302_v1 = vmax.f32 %v182_v57, 0.0  ;;  %v246_v3 = vadd.f32 %v1048_v0, %v1323_v55  ;;  %v237_v4 = vpop.f32.mrb[1].mxu1 }
  0xdd   :  { %v177_v63 = vadd.f32 %v1323_v55, %v176_v62  ;;  %v300_v5 = vmax.f32 %v174_v59, 0.0  ;;  %v238_v7 = vadd.f32 %v1323_v55, %v237_v4  ;;  %v1049_v8 = vpop.f32.mrb[2].mxu1 }
  0xde   :  { %v303_v2 = vmax.f32 %v185_v61, 0.0  ;;  %v318_v10 = vmax.f32 %v246_v3, 0.0  ;;  %v249_v11 = vadd.f32 %v1049_v8, %v1323_v55  ;;  %v240_v12 = vpop.f32.mrb[3].mxu1 }
  0xdf   :  { %v301_v6 = vmax.f32 %v177_v63, 0.0  ;;  %v316_v15 = vmax.f32 %v238_v7, 0.0  ;;  %v241_v16 = vadd.f32 %v1323_v55, %v240_v12 }
  0xe0   :  { %v333_v9 = vpack.c.bf16 %v303_v2, %v302_v1  ;;  %v319_v19 = vmax.f32 %v249_v11, 0.0 }
  0xe1   :  { %v332_v13 = vpack.c.bf16 %v301_v6, %v300_v5  ;;  %v1036_v14 = vpop.f32.mrb[4].mxu0  ;;  %v317_v22 = vmax.f32 %v241_v16, 0.0 }
  0xe2   :  { %v198_v17 = vadd.f32 %v1036_v14, %v1323_v55  ;;  %v189_v18 = vpop.f32.mrb[5].mxu0  ;;  %v1338_v25 = vpack.c.bf16 %v319_v19, %v318_v10 }
  0xe3   :  { %v190_v20 = vadd.f32 %v1323_v55, %v189_v18  ;;  %v1037_v21 = vpop.f32.mrb[6].mxu0  ;;  %1070 = vmatprep.mubr.msk.bf16.mxu1 %vm387_vm1, %v332_v13  ;;  %v1341_v27 = vpack.c.bf16 %v317_v22, %v316_v15  ;;  %v1052_v28 = vpop.f32.mrb[4].mxu1 }
  0xe4   :  { %v201_v23 = vadd.f32 %v1037_v21, %v1323_v55  ;;  %v192_v24 = vpop.f32.mrb[7].mxu0  ;;  %1071 = vmatmul.mubr.msk.bf16.vlgmr.msra.gmra.mrb[16].mxu1 %vm387_vm1, %v333_v9  ;;  %v306_v29 = vmax.f32 %v198_v17, 0.0  ;;  %v262_v31 = vadd.f32 %v1052_v28, %v1323_v55  ;;  %v253_v32 = vpop.f32.mrb[5].mxu1 }
  0xe5   :  { %v193_v26 = vadd.f32 %v1323_v55, %v192_v24  ;;  %v304_v33 = vmax.f32 %v190_v20, 0.0  ;;  %v254_v35 = vadd.f32 %v1323_v55, %v253_v32  ;;  %v1053_v36 = vpop.f32.mrb[6].mxu1 }
  0xe6   :  { %v307_v30 = vmax.f32 %v201_v23, 0.0  ;;  %v322_v38 = vmax.f32 %v262_v31, 0.0  ;;  %v265_v39 = vadd.f32 %v1053_v36, %v1323_v55  ;;  %v256_v40 = vpop.f32.mrb[7].mxu1 }
  0xe7   :  { %v305_v34 = vmax.f32 %v193_v26, 0.0  ;;  %v320_v43 = vmax.f32 %v254_v35, 0.0  ;;  %v257_v44 = vadd.f32 %v1323_v55, %v256_v40 }
  0xe8   :  { %v335_v37 = vpack.c.bf16 %v307_v30, %v306_v29  ;;  %v323_v47 = vmax.f32 %v265_v39, 0.0 }
  0xe9   :  { %v334_v41 = vpack.c.bf16 %v305_v34, %v304_v33  ;;  %v1040_v42 = vpop.f32.mrb[8].mxu0  ;;  %v321_v50 = vmax.f32 %v257_v44, 0.0 }
  0xea   :  { %v214_v45 = vadd.f32 %v1040_v42, %v1323_v55  ;;  %v205_v46 = vpop.f32.mrb[9].mxu0  ;;  %v343_v53 = vpack.c.bf16 %v323_v47, %v322_v38 }
  0xeb   :  { %v206_v48 = vadd.f32 %v1323_v55, %v205_v46  ;;  %v1041_v49 = vpop.f32.mrb[10].mxu0  ;;  %1074 = vmatprep.mubr.msk.bf16.mxu1 %vm387_vm1, %v334_v41  ;;  %v342_v56 = vpack.c.bf16 %v321_v50, %v320_v43  ;;  %v1056_v57 = vpop.f32.mrb[8].mxu1 }
  0xec   :  { %v217_v51 = vadd.f32 %v1041_v49, %v1323_v55  ;;  %v208_v52 = vpop.f32.mrb[11].mxu0  ;;  %1075 = vmatmul.mubr.msk.bf16.gmra.mrb[20].mxu1 %vm387_vm1, %v335_v37  ;;  %v310_v58 = vmax.f32 %v214_v45, 0.0  ;;  %v278_v60 = vadd.f32 %v1056_v57, %v1323_v55  ;;  %v269_v61 = vpop.f32.mrb[9].mxu1 }
  0xed   :  { %v209_v54 = vadd.f32 %v1323_v55, %v208_v52  ;;  %v308_v62 = vmax.f32 %v206_v48, 0.0  ;;  %v270_v0 = vadd.f32 %v1323_v55, %v269_v61  ;;  %v1057_v1 = vpop.f32.mrb[10].mxu1 }
  0xee   :  { %v311_v59 = vmax.f32 %v217_v51, 0.0  ;;  %v326_v3 = vmax.f32 %v278_v60, 0.0  ;;  %v281_v4 = vadd.f32 %v1057_v1, %v1323_v55  ;;  %v272_v5 = vpop.f32.mrb[11].mxu1 }
  0xef   :  { %v309_v63 = vmax.f32 %v209_v54, 0.0  ;;  %v324_v8 = vmax.f32 %v270_v0, 0.0  ;;  %v273_v9 = vadd.f32 %v1323_v55, %v272_v5 }
  0xf0   :  { %v337_v2 = vpack.c.bf16 %v311_v59, %v310_v58  ;;  %v327_v12 = vmax.f32 %v281_v4, 0.0 }
  0xf1   :  { %v336_v6 = vpack.c.bf16 %v309_v63, %v308_v62  ;;  %v1044_v7 = vpop.f32.mrb[12].mxu0  ;;  %v325_v15 = vmax.f32 %v273_v9, 0.0 }
  0xf2   :  { %v230_v10 = vadd.f32 %v1044_v7, %v1323_v55  ;;  %v221_v11 = vpop.f32.mrb[13].mxu0  ;;  %v345_v18 = vpack.c.bf16 %v327_v12, %v326_v3 }
  0xf3   :  { %v222_v13 = vadd.f32 %v1323_v55, %v221_v11  ;;  %v1045_v14 = vpop.f32.mrb[14].mxu0  ;;  %1078 = vmatprep.mubr.msk.bf16.mxu1 %vm387_vm1, %v336_v6  ;;  %v344_v20 = vpack.c.bf16 %v325_v15, %v324_v8  ;;  %v1060_v21 = vpop.f32.mrb[12].mxu1 }
  0xf4   :  { %v233_v16 = vadd.f32 %v1045_v14, %v1323_v55  ;;  %v224_v17 = vpop.f32.mrb[15].mxu0  ;;  %1079 = vmatmul.mubr.msk.bf16.gmra.mrb[24].mxu1 %vm387_vm1, %v337_v2  ;;  %v314_v22 = vmax.f32 %v230_v10, 0.0  ;;  %v294_v24 = vadd.f32 %v1060_v21, %v1323_v55  ;;  %v285_v26 = vpop.f32.mrb[13].mxu1 }
  0xf5   :  { %v225_v19 = vadd.f32 %v1323_v55, %v224_v17  ;;  %v312_v28 = vmax.f32 %v222_v13, 0.0  ;;  %v286_v30 = vadd.f32 %v1323_v55, %v285_v26  ;;  %v1061_v31 = vpop.f32.mrb[14].mxu1 }
  0xf6   :  { %v315_v23 = vmax.f32 %v233_v16, 0.0  ;;  %v330_v33 = vmax.f32 %v294_v24, 0.0  ;;  %v297_v34 = vadd.f32 %v1061_v31, %v1323_v55  ;;  %v288_v35 = vpop.f32.mrb[15].mxu1 }
  0xf7   :  { %v313_v29 = vmax.f32 %v225_v19, 0.0  ;;  %v328_v37 = vmax.f32 %v286_v30, 0.0  ;;  %v289_v38 = vadd.f32 %v1323_v55, %v288_v35  ;;  %v1382_v55 = vld [vmem:[%s1602_s4] ss:$0 sm:$0xff] }
  0xf8   :  { %v339_v32 = vpack.c.bf16 %v315_v23, %v314_v22  ;;  %v331_v39 = vmax.f32 %v297_v34, 0.0 }
  0xf9   :  { %v338_v36 = vpack.c.bf16 %v313_v29, %v312_v28  ;;  %v329_v40 = vmax.f32 %v289_v38, 0.0 }
  0xfa   :  { %v347_v41 = vpack.c.bf16 %v331_v39, %v330_v33 }
  0xfb   :  { %1082 = vmatprep.mubr.msk.bf16.mxu1 %vm387_vm1, %v338_v36  ;;  %v346_v42 = vpack.c.bf16 %v329_v40, %v328_v37 }
  0xfc   :  { %1083 = vmatmul.mubr.msk.bf16.gmra.mrb[28].mxu1 %vm387_vm1, %v339_v32 }
  0xfd   :  { %1086 = vmatprep.mubr.msk.bf16.mxu1 %vm387_vm1, %v1341_v27 }
 0x104   :  { %1087 = vmatmul.mubr.msk.bf16.gmra.mrb[32].mxu1 %vm387_vm1, %v1338_v25 }
 0x105   :  { %1090 = vmatprep.mubr.msk.bf16.mxu1 %vm387_vm1, %v342_v56 }
 0x10c   :  { %1091 = vmatmul.mubr.msk.bf16.gmra.mrb[36].mxu1 %vm387_vm1, %v343_v53 }
 0x10d   :  { %1094 = vmatprep.mubr.msk.bf16.mxu1 %vm387_vm1, %v344_v20 }
 0x114   :  { %1095 = vmatmul.mubr.msk.bf16.gmra.mrb[40].mxu1 %vm387_vm1, %v345_v18 }
 0x115   :  { %1098 = vmatprep.mubr.msk.bf16.mxu1 %vm387_vm1, %v346_v42 }
 0x11c   :  { %1099 = vmatmul.mubr.msk.bf16.gmra.mrb[44].mxu1 %vm387_vm1, %v347_v41 }
 0x1b7   :  { %v1072_v27 = vpop.f32.mrb[16].mxu1 }
 0x1b8   :  { %v479_v25 = vadd.f32 %v1072_v27, %v1382_v55  ;;  %v470_v43 = vpop.f32.mrb[17].mxu1 }
 0x1b9   :  { %v471_v44 = vadd.f32 %v1382_v55, %v470_v43  ;;  %v1073_v45 = vpop.f32.mrb[18].mxu1 }
 0x1ba   :  { %v482_v46 = vadd.f32 %v1073_v45, %v1382_v55  ;;  %v473_v47 = vpop.f32.mrb[19].mxu1  ;;  %v599_v49 = vmax.f32 %v479_v25, 0.0 }
 0x1bb   :  { %v474_v48 = vadd.f32 %v1382_v55, %v473_v47  ;;  %v597_v51 = vmax.f32 %v471_v44, 0.0 }
 0x1bc   :  { %v600_v50 = vmax.f32 %v482_v46, 0.0 }
 0x1bd   :  { %v598_v52 = vmax.f32 %v474_v48, 0.0 }
 0x1be   :  { %v630_v53 = vpack.c.bf16 %v600_v50, %v599_v49 }
 0x1bf   :  { %v629_v54 = vpack.c.bf16 %v598_v52, %v597_v51  ;;  %v1076_v56 = vpop.f32.mrb[20].mxu1 }
 0x1c0   :  { %v495_v57 = vadd.f32 %v1076_v56, %v1382_v55  ;;  %v486_v58 = vpop.f32.mrb[21].mxu1 }
 0x1c1   :  { %v487_v59 = vadd.f32 %v1382_v55, %v486_v58  ;;  %v1077_v60 = vpop.f32.mrb[22].mxu1  ;;  %1106 = vmatprep.mubr.msk.bf16.mxu0 %vm668_vm2, %v629_v54 }
 0x1c2   :  { %v498_v61 = vadd.f32 %v1077_v60, %v1382_v55  ;;  %v489_v62 = vpop.f32.mrb[23].mxu1  ;;  %1107 = vmatmul.mubr.msk.bf16.vlgmr.msra.gmra.mrb[16].mxu0 %vm668_vm2, %v630_v53  ;;  %v603_v0 = vmax.f32 %v495_v57, 0.0 }
 0x1c3   :  { %v490_v63 = vadd.f32 %v1382_v55, %v489_v62  ;;  %v601_v2 = vmax.f32 %v487_v59, 0.0 }
 0x1c4   :  { %v604_v1 = vmax.f32 %v498_v61, 0.0 }
 0x1c5   :  { %v602_v3 = vmax.f32 %v490_v63, 0.0 }
 0x1c6   :  { %v632_v4 = vpack.c.bf16 %v604_v1, %v603_v0 }
 0x1c7   :  { %v631_v5 = vpack.c.bf16 %v602_v3, %v601_v2  ;;  %v1080_v6 = vpop.f32.mrb[24].mxu1 }
 0x1c8   :  { %v511_v7 = vadd.f32 %v1080_v6, %v1382_v55  ;;  %v502_v8 = vpop.f32.mrb[25].mxu1 }
 0x1c9   :  { %v503_v9 = vadd.f32 %v1382_v55, %v502_v8  ;;  %v1081_v10 = vpop.f32.mrb[26].mxu1  ;;  %1110 = vmatprep.mubr.msk.bf16.mxu0 %vm668_vm2, %v631_v5 }
 0x1ca   :  { %v514_v11 = vadd.f32 %v1081_v10, %v1382_v55  ;;  %v505_v12 = vpop.f32.mrb[27].mxu1  ;;  %1111 = vmatmul.mubr.msk.bf16.gmra.mrb[20].mxu0 %vm668_vm2, %v632_v4  ;;  %v607_v14 = vmax.f32 %v511_v7, 0.0 }
 0x1cb   :  { %v506_v13 = vadd.f32 %v1382_v55, %v505_v12  ;;  %v605_v16 = vmax.f32 %v503_v9, 0.0 }
 0x1cc   :  { %v608_v15 = vmax.f32 %v514_v11, 0.0 }
 0x1cd   :  { %v606_v17 = vmax.f32 %v506_v13, 0.0 }
 0x1ce   :  { %v634_v18 = vpack.c.bf16 %v608_v15, %v607_v14 }
 0x1cf   :  { %v633_v19 = vpack.c.bf16 %v606_v17, %v605_v16  ;;  %v1084_v20 = vpop.f32.mrb[28].mxu1 }
 0x1d0   :  { %v527_v21 = vadd.f32 %v1084_v20, %v1382_v55  ;;  %v518_v22 = vpop.f32.mrb[29].mxu1 }
 0x1d1   :  { %v519_v23 = vadd.f32 %v1382_v55, %v518_v22  ;;  %v1085_v24 = vpop.f32.mrb[30].mxu1  ;;  %1114 = vmatprep.mubr.msk.bf16.mxu0 %vm668_vm2, %v633_v19 }
 0x1d2   :  { %v530_v26 = vadd.f32 %v1085_v24, %v1382_v55  ;;  %v521_v28 = vpop.f32.mrb[31].mxu1  ;;  %1115 = vmatmul.mubr.msk.bf16.gmra.mrb[24].mxu0 %vm668_vm2, %v634_v18  ;;  %v611_v30 = vmax.f32 %v527_v21, 0.0 }
 0x1d3   :  { %v522_v29 = vadd.f32 %v1382_v55, %v521_v28  ;;  %v609_v32 = vmax.f32 %v519_v23, 0.0 }
 0x1d4   :  { %v612_v31 = vmax.f32 %v530_v26, 0.0 }
 0x1d5   :  { %v610_v33 = vmax.f32 %v522_v29, 0.0  ;;  %v1435_v29 = vld [vmem:[%s1603_s6] ss:$0 sm:$0xff] }
 0x1d6   :  { %v636_v34 = vpack.c.bf16 %v612_v31, %v611_v30 }
 0x1d7   :  { %v635_v35 = vpack.c.bf16 %v610_v33, %v609_v32  ;;  %v1088_v36 = vpop.f32.mrb[32].mxu1 }
 0x1d8   :  { %v543_v37 = vadd.f32 %v1088_v36, %v1382_v55  ;;  %v534_v38 = vpop.f32.mrb[33].mxu1 }
 0x1d9   :  { %v535_v39 = vadd.f32 %v1382_v55, %v534_v38  ;;  %v1089_v40 = vpop.f32.mrb[34].mxu1  ;;  %1118 = vmatprep.mubr.msk.bf16.mxu0 %vm668_vm2, %v635_v35 }
 0x1da   :  { %v546_v41 = vadd.f32 %v1089_v40, %v1382_v55  ;;  %v537_v42 = vpop.f32.mrb[35].mxu1  ;;  %1119 = vmatmul.mubr.msk.bf16.gmra.mrb[28].mxu0 %vm668_vm2, %v636_v34  ;;  %v615_v25 = vmax.f32 %v543_v37, 0.0 }
 0x1db   :  { %v538_v27 = vadd.f32 %v1382_v55, %v537_v42  ;;  %v613_v44 = vmax.f32 %v535_v39, 0.0 }
 0x1dc   :  { %v616_v43 = vmax.f32 %v546_v41, 0.0 }
 0x1dd   :  { %v614_v45 = vmax.f32 %v538_v27, 0.0 }
 0x1de   :  { %v638_v46 = vpack.c.bf16 %v616_v43, %v615_v25 }
 0x1df   :  { %v637_v47 = vpack.c.bf16 %v614_v45, %v613_v44  ;;  %v1092_v48 = vpop.f32.mrb[36].mxu1 }
 0x1e0   :  { %v559_v49 = vadd.f32 %v1092_v48, %v1382_v55  ;;  %v550_v50 = vpop.f32.mrb[37].mxu1 }
 0x1e1   :  { %v551_v51 = vadd.f32 %v1382_v55, %v550_v50  ;;  %v1093_v52 = vpop.f32.mrb[38].mxu1  ;;  %1122 = vmatprep.mubr.msk.bf16.mxu0 %vm668_vm2, %v637_v47 }
 0x1e2   :  { %v562_v53 = vadd.f32 %v1093_v52, %v1382_v55  ;;  %v553_v54 = vpop.f32.mrb[39].mxu1  ;;  %1123 = vmatmul.mubr.msk.bf16.gmra.mrb[32].mxu0 %vm668_vm2, %v638_v46  ;;  %v619_v57 = vmax.f32 %v559_v49, 0.0 }
 0x1e3   :  { %v554_v56 = vadd.f32 %v1382_v55, %v553_v54  ;;  %v617_v59 = vmax.f32 %v551_v51, 0.0 }
 0x1e4   :  { %v620_v58 = vmax.f32 %v562_v53, 0.0 }
 0x1e5   :  { %v618_v60 = vmax.f32 %v554_v56, 0.0 }
 0x1e6   :  { %v640_v61 = vpack.c.bf16 %v620_v58, %v619_v57 }
 0x1e7   :  { %v639_v62 = vpack.c.bf16 %v618_v60, %v617_v59  ;;  %v1096_v63 = vpop.f32.mrb[40].mxu1 }
 0x1e8   :  { %v575_v0 = vadd.f32 %v1096_v63, %v1382_v55  ;;  %v566_v1 = vpop.f32.mrb[41].mxu1 }
 0x1e9   :  { %v567_v2 = vadd.f32 %v1382_v55, %v566_v1  ;;  %v1097_v3 = vpop.f32.mrb[42].mxu1  ;;  %1126 = vmatprep.mubr.msk.bf16.mxu0 %vm668_vm2, %v639_v62 }
 0x1ea   :  { %v578_v4 = vadd.f32 %v1097_v3, %v1382_v55  ;;  %v569_v5 = vpop.f32.mrb[43].mxu1  ;;  %1127 = vmatmul.mubr.msk.bf16.gmra.mrb[36].mxu0 %vm668_vm2, %v640_v61  ;;  %v623_v7 = vmax.f32 %v575_v0, 0.0 }
 0x1eb   :  { %v570_v6 = vadd.f32 %v1382_v55, %v569_v5  ;;  %v621_v9 = vmax.f32 %v567_v2, 0.0 }
 0x1ec   :  { %v624_v8 = vmax.f32 %v578_v4, 0.0 }
 0x1ed   :  { %v622_v10 = vmax.f32 %v570_v6, 0.0 }
 0x1ee   :  { %v642_v11 = vpack.c.bf16 %v624_v8, %v623_v7 }
 0x1ef   :  { %v641_v12 = vpack.c.bf16 %v622_v10, %v621_v9  ;;  %v1100_v13 = vpop.f32.mrb[44].mxu1 }
 0x1f0   :  { %v591_v14 = vadd.f32 %v1100_v13, %v1382_v55  ;;  %v582_v15 = vpop.f32.mrb[45].mxu1 }
 0x1f1   :  { %v583_v16 = vadd.f32 %v1382_v55, %v582_v15  ;;  %v1101_v17 = vpop.f32.mrb[46].mxu1  ;;  %1130 = vmatprep.mubr.msk.bf16.mxu0 %vm668_vm2, %v641_v12 }
 0x1f2   :  { %v594_v18 = vadd.f32 %v1101_v17, %v1382_v55  ;;  %v585_v19 = vpop.f32.mrb[47].mxu1  ;;  %1131 = vmatmul.mubr.msk.bf16.gmra.mrb[40].mxu0 %vm668_vm2, %v642_v11  ;;  %v627_v21 = vmax.f32 %v591_v14, 0.0 }
 0x1f3   :  { %v586_v20 = vadd.f32 %v1382_v55, %v585_v19  ;;  %v625_v23 = vmax.f32 %v583_v16, 0.0 }
 0x1f4   :  { %v628_v22 = vmax.f32 %v594_v18, 0.0 }
 0x1f5   :  { %v626_v24 = vmax.f32 %v586_v20, 0.0 }
 0x1f6   :  { %v644_v26 = vpack.c.bf16 %v628_v22, %v627_v21 }
 0x1f7   :  { %v643_v28 = vpack.c.bf16 %v626_v24, %v625_v23 }
 0x1f9   :  { %1134 = vmatprep.mubr.msk.bf16.mxu0 %vm668_vm2, %v643_v28 }
 0x1fa   :  { %1135 = vmatmul.mubr.msk.bf16.gmra.mrb[44].mxu0 %vm668_vm2, %v644_v26 }
 0x295   :  { %v1108_v30 = vpop.f32.mrb[16].mxu0 }
 0x296   :  { %v760_v31 = vadd.f32 %v1108_v30, %v1435_v29  ;;  %v751_v55 = vpop.f32.mrb[17].mxu0 }
 0x297   :  { %v752_v32 = vadd.f32 %v1435_v29, %v751_v55  ;;  %v1109_v33 = vpop.f32.mrb[18].mxu0 }
 0x298   :  { %881 = vst.msk [vmem:[%s1604_s7 + $0x10] sm:$0xff] %vm878_vm3, %v760_v31  ;;  %v763_v34 = vadd.f32 %v1109_v33, %v1435_v29  ;;  %v754_v35 = vpop.f32.mrb[19].mxu0 }
 0x299   :  { %879 = vst.msk [vmem:[%s1604_s7] sm:$0xff] %vm878_vm3, %v752_v32  ;;  %v755_v36 = vadd.f32 %v1435_v29, %v754_v35 }
 0x29a   :  { %882 = vst.msk [vmem:[%s1604_s7 + $0x18] sm:$0xff] %vm878_vm3, %v763_v34 }
 0x29b   :  { %880 = vst.msk [vmem:[%s1604_s7 + $0x8] sm:$0xff] %vm878_vm3, %v755_v36 }
 0x29d   :  { %v1112_v37 = vpop.f32.mrb[20].mxu0 }
 0x29e   :  { %v776_v38 = vadd.f32 %v1112_v37, %v1435_v29  ;;  %v767_v39 = vpop.f32.mrb[21].mxu0 }
 0x29f   :  { %v768_v40 = vadd.f32 %v1435_v29, %v767_v39  ;;  %v1113_v41 = vpop.f32.mrb[22].mxu0 }
 0x2a0   :  { %885 = vst.msk [vmem:[%s1604_s7 + $0x30] sm:$0xff] %vm878_vm3, %v776_v38  ;;  %v779_v42 = vadd.f32 %v1113_v41, %v1435_v29  ;;  %v770_v27 = vpop.f32.mrb[23].mxu0 }
 0x2a1   :  { %883 = vst.msk [vmem:[%s1604_s7 + $0x20] sm:$0xff] %vm878_vm3, %v768_v40  ;;  %v771_v25 = vadd.f32 %v1435_v29, %v770_v27 }
 0x2a2   :  { %886 = vst.msk [vmem:[%s1604_s7 + $0x38] sm:$0xff] %vm878_vm3, %v779_v42 }
 0x2a3   :  { %884 = vst.msk [vmem:[%s1604_s7 + $0x28] sm:$0xff] %vm878_vm3, %v771_v25 }
 0x2a5   :  { %v1116_v43 = vpop.f32.mrb[24].mxu0 }
 0x2a6   :  { %v792_v44 = vadd.f32 %v1116_v43, %v1435_v29  ;;  %v783_v45 = vpop.f32.mrb[25].mxu0 }
 0x2a7   :  { %v784_v46 = vadd.f32 %v1435_v29, %v783_v45  ;;  %v1117_v47 = vpop.f32.mrb[26].mxu0 }
 0x2a8   :  { %889 = vst.msk [vmem:[%s1604_s7 + $0x50] sm:$0xff] %vm878_vm3, %v792_v44  ;;  %v795_v48 = vadd.f32 %v1117_v47, %v1435_v29  ;;  %v786_v49 = vpop.f32.mrb[27].mxu0 }
 0x2a9   :  { %887 = vst.msk [vmem:[%s1604_s7 + $0x40] sm:$0xff] %vm878_vm3, %v784_v46  ;;  %v787_v50 = vadd.f32 %v1435_v29, %v786_v49 }
 0x2aa   :  { %890 = vst.msk [vmem:[%s1604_s7 + $0x58] sm:$0xff] %vm878_vm3, %v795_v48 }
 0x2ab   :  { %888 = vst.msk [vmem:[%s1604_s7 + $0x48] sm:$0xff] %vm878_vm3, %v787_v50 }
 0x2ad   :  { %v1120_v51 = vpop.f32.mrb[28].mxu0 }
 0x2ae   :  { %v808_v52 = vadd.f32 %v1120_v51, %v1435_v29  ;;  %v799_v53 = vpop.f32.mrb[29].mxu0 }
 0x2af   :  { %v800_v54 = vadd.f32 %v1435_v29, %v799_v53  ;;  %v1121_v56 = vpop.f32.mrb[30].mxu0 }
 0x2b0   :  { %893 = vst.msk [vmem:[%s1604_s7 + $0x70] sm:$0xff] %vm878_vm3, %v808_v52  ;;  %v811_v57 = vadd.f32 %v1121_v56, %v1435_v29  ;;  %v802_v58 = vpop.f32.mrb[31].mxu0 }
 0x2b1   :  { %891 = vst.msk [vmem:[%s1604_s7 + $0x60] sm:$0xff] %vm878_vm3, %v800_v54  ;;  %v803_v59 = vadd.f32 %v1435_v29, %v802_v58 }
 0x2b2   :  { %894 = vst.msk [vmem:[%s1604_s7 + $0x78] sm:$0xff] %vm878_vm3, %v811_v57 }
 0x2b3   :  { %892 = vst.msk [vmem:[%s1604_s7 + $0x68] sm:$0xff] %vm878_vm3, %v803_v59 }
 0x2b5   :  { %v1124_v60 = vpop.f32.mrb[32].mxu0 }
 0x2b6   :  { %v824_v61 = vadd.f32 %v1124_v60, %v1435_v29  ;;  %v815_v62 = vpop.f32.mrb[33].mxu0 }
 0x2b7   :  { %v816_v63 = vadd.f32 %v1435_v29, %v815_v62  ;;  %v1125_v0 = vpop.f32.mrb[34].mxu0 }
 0x2b8   :  { %897 = vst.msk [vmem:[%s1604_s7 + $0x90] sm:$0xff] %vm878_vm3, %v824_v61  ;;  %v827_v1 = vadd.f32 %v1125_v0, %v1435_v29  ;;  %v818_v2 = vpop.f32.mrb[35].mxu0 }
 0x2b9   :  { %895 = vst.msk [vmem:[%s1604_s7 + $0x80] sm:$0xff] %vm878_vm3, %v816_v63  ;;  %v819_v3 = vadd.f32 %v1435_v29, %v818_v2 }
 0x2ba   :  { %898 = vst.msk [vmem:[%s1604_s7 + $0x98] sm:$0xff] %vm878_vm3, %v827_v1 }
 0x2bb   :  { %896 = vst.msk [vmem:[%s1604_s7 + $0x88] sm:$0xff] %vm878_vm3, %v819_v3 }
 0x2bd   :  { %v1128_v4 = vpop.f32.mrb[36].mxu0 }
 0x2be   :  { %v840_v5 = vadd.f32 %v1128_v4, %v1435_v29  ;;  %v831_v6 = vpop.f32.mrb[37].mxu0 }
 0x2bf   :  { %v832_v7 = vadd.f32 %v1435_v29, %v831_v6  ;;  %v1129_v8 = vpop.f32.mrb[38].mxu0 }
 0x2c0   :  { %901 = vst.msk [vmem:[%s1604_s7 + $0xb0] sm:$0xff] %vm878_vm3, %v840_v5  ;;  %v843_v9 = vadd.f32 %v1129_v8, %v1435_v29  ;;  %v834_v10 = vpop.f32.mrb[39].mxu0 }
 0x2c1   :  { %899 = vst.msk [vmem:[%s1604_s7 + $0xa0] sm:$0xff] %vm878_vm3, %v832_v7  ;;  %v835_v11 = vadd.f32 %v1435_v29, %v834_v10 }
 0x2c2   :  { %902 = vst.msk [vmem:[%s1604_s7 + $0xb8] sm:$0xff] %vm878_vm3, %v843_v9 }
 0x2c3   :  { %900 = vst.msk [vmem:[%s1604_s7 + $0xa8] sm:$0xff] %vm878_vm3, %v835_v11 }
 0x2c5   :  { %v1132_v12 = vpop.f32.mrb[40].mxu0 }
 0x2c6   :  { %v856_v13 = vadd.f32 %v1132_v12, %v1435_v29  ;;  %v847_v14 = vpop.f32.mrb[41].mxu0 }
 0x2c7   :  { %v848_v15 = vadd.f32 %v1435_v29, %v847_v14  ;;  %v1133_v16 = vpop.f32.mrb[42].mxu0 }
 0x2c8   :  { %905 = vst.msk [vmem:[%s1604_s7 + $0xd0] sm:$0xff] %vm878_vm3, %v856_v13  ;;  %v859_v17 = vadd.f32 %v1133_v16, %v1435_v29  ;;  %v850_v18 = vpop.f32.mrb[43].mxu0 }
 0x2c9   :  { %903 = vst.msk [vmem:[%s1604_s7 + $0xc0] sm:$0xff] %vm878_vm3, %v848_v15  ;;  %v851_v19 = vadd.f32 %v1435_v29, %v850_v18 }
 0x2ca   :  { %906 = vst.msk [vmem:[%s1604_s7 + $0xd8] sm:$0xff] %vm878_vm3, %v859_v17 }
 0x2cb   :  { %904 = vst.msk [vmem:[%s1604_s7 + $0xc8] sm:$0xff] %vm878_vm3, %v851_v19 }
 0x2cd   :  { %v1136_v20 = vpop.f32.mrb[44].mxu0 }
 0x2ce   :  { %v872_v21 = vadd.f32 %v1136_v20, %v1435_v29  ;;  %v863_v22 = vpop.f32.mrb[45].mxu0 }
 0x2cf   :  { %v864_v23 = vadd.f32 %v1435_v29, %v863_v22  ;;  %v1137_v24 = vpop.f32.mrb[46].mxu0 }
 0x2d0   :  { %909 = vst.msk [vmem:[%s1604_s7 + $0xf0] sm:$0xff] %vm878_vm3, %v872_v21  ;;  %v875_v26 = vadd.f32 %v1137_v24, %v1435_v29  ;;  %v866_v28 = vpop.f32.mrb[47].mxu0 }
 0x2d1   :  { %907 = vst.msk [vmem:[%s1604_s7 + $0xe0] sm:$0xff] %vm878_vm3, %v864_v23  ;;  %v867_v30 = vadd.f32 %v1435_v29, %v866_v28 }
 0x2d2   :  { %910 = vst.msk [vmem:[%s1604_s7 + $0xf8] sm:$0xff] %vm878_vm3, %v875_v26 }
 0x2d3   :  { %908 = vst.msk [vmem:[%s1604_s7 + $0xe8] sm:$0xff] %vm878_vm3, %v867_v30 }

</bundles_post_ra>
